<compile_context>
chip_gen: v5e
topology: v5e:2x2
jax: 0.10.0
libtpu: 0.0.40
codegen_flags: <defaults>
</compile_context>

<pallas_src>
import functools

import jax
import jax.numpy as jnp
from jax.experimental import pallas as pl
from jax.experimental.pallas import tpu as pltpu


# ----------------------------------------------------------------------------
# Layout / im2col helpers (XLA wrapper glue)
# ----------------------------------------------------------------------------
def _to_cm(x):
    """NHWC (B,H,W,C) -> channel-major (C, B*H*W)."""
    B, H, W, C = x.shape
    return jnp.transpose(x, (3, 0, 1, 2)).reshape(C, B * H * W)


def _from_cm(x_cm, B, H, W):
    """(C, B*H*W) -> NHWC (B,H,W,C)."""
    C = x_cm.shape[0]
    return jnp.transpose(x_cm.reshape(C, B, H, W), (1, 2, 3, 0))


def _im2col_t(z, k):
    """NHWC (B,H,W,C) -> (k*k*C, B*H*W); rows ordered (kh, kw, cin) to match an
    HWIO weight reshaped to (k*k*C, cout)."""
    B, H, W, C = z.shape
    pad = (k - 1) // 2
    zp = jnp.pad(z, ((0, 0), (pad, pad), (pad, pad), (0, 0)))
    cols = [zp[:, kh:kh + H, kw:kw + W, :] for kh in range(k) for kw in range(k)]
    p = jnp.stack(cols, axis=0)                 # (k*k, B, H, W, C)
    p = jnp.transpose(p, (0, 4, 1, 2, 3))       # (k*k, C, B, H, W)
    return p.reshape(k * k * C, B * H * W)


def _im2col_t_cm(z_cm, B, H, W, k):
    """Channel-major (C, B*H*W) -> (k*k*C, B*H*W); same row ordering as above.
    Works directly on the kernel-1 output layout, so no big transpose needed."""
    C = z_cm.shape[0]
    pad = (k - 1) // 2
    z = z_cm.reshape(C, B, H, W)
    zp = jnp.pad(z, ((0, 0), (0, 0), (pad, pad), (pad, pad)))
    cols = [zp[:, :, kh:kh + H, kw:kw + W] for kh in range(k) for kw in range(k)]
    p = jnp.stack(cols, axis=0)                 # (k*k, C, B, H, W)
    return p.reshape(k * k * C, B * H * W)


def _m_tile(M):
    """Split the lane dim in two (one grid step per v7x TensorCore) only when
    each half is still >= 512 lanes (4 f32 vregs); below that the extra fixed
    grid-step overhead dominates on single-TC v5e/v6e."""
    if M >= 1024 and (M // 2) % 128 == 0:
        return M // 2
    return M


# ----------------------------------------------------------------------------
# CSCNet kernels
# ----------------------------------------------------------------------------
def _decode_residual_kernel(p_ref, w_ref, x_ref, temp_ref):
    """temp = data_x - conv_dec(code_z) on one lane tile.

    p_ref:    (k*k*Cz, m)  im2col patches of code_z
    w_ref:    (Cx, k*k*Cz) decoder weights (HWIO, pre-transposed)
    x_ref:    (Cx, m)      data_x, channel-major
    temp_ref: (Cx, m)
    """
    dec = jnp.dot(w_ref[...], p_ref[...], preferred_element_type=jnp.float32)
    temp_ref[...] = (x_ref[...] - dec).astype(temp_ref.dtype)


def _encode_bn_lrelu_kernel(p_ref, w_ref, z_ref, g_ref, b_ref, out_ref, *,
                            eps, slope):
    """out = LeakyReLU(BN(code_z + conv_enc(temp))), whole batch in one block.

    BatchNorm2d in the module's default training-mode forward: per-channel
    statistics over (N, H, W) (= the lane axis here), biased variance, then the
    affine transform.  The running-stat EMA update is a training-time buffer
    side effect, not part of the returned value.
    """
    y = z_ref[...] + jnp.dot(w_ref[...], p_ref[...],
                             preferred_element_type=jnp.float32)   # (Cz, M)
    inv_m = 1.0 / y.shape[-1]
    mean = jnp.sum(y, axis=-1, keepdims=True) * inv_m              # (Cz, 1)
    yc = y - mean
    var = jnp.sum(yc * yc, axis=-1, keepdims=True) * inv_m         # biased (PyTorch)
    scale = jax.lax.rsqrt(var + eps) * g_ref[...]                  # EUP rsqrt
    ybn = yc * scale + b_ref[...]
    out_ref[...] = jnp.where(ybn >= 0, ybn, slope * ybn).astype(out_ref.dtype)


def cscnet_forward(data_x, code_z, w_dec, w_enc, gamma, beta, *, eps=1e-5,
                   negative_slope=0.2):
    """CSCNet.forward.

    data_x: (B,H,W,Cin)  NHWC    code_z: (B,H,W,Cout) NHWC
    w_dec:  (k,k,Cout,Cin) HWIO  (PyTorch Conv2d(out_channel, in_channels))
    w_enc:  (k,k,Cin,Cout) HWIO  (PyTorch Conv2d(in_channels, out_channel))
    gamma, beta: (Cout,) BatchNorm2d affine parameters.
    Returns the updated code_z, NHWC (B,H,W,Cout).
    """
    B, H, W, cin = data_x.shape
    cz = code_z.shape[-1]
    k = w_dec.shape[0]
    M = B * H * W
    dtype = code_z.dtype

    # ---- stage 1: temp = data_x - conv_dec(code_z)  (one MXU matmul) --------
    p1 = _im2col_t(code_z, k)                       # (k*k*Cz, M)
    K1 = p1.shape[0]
    wdec_t = w_dec.reshape(K1, cin).T               # (Cx, K1)
    x_cm = _to_cm(data_x)                           # (Cx, M)

    m_tile = _m_tile(M)
    grid = (M // m_tile,)
    ce1 = pl.CostEstimate(flops=2 * M * cin * K1, transcendentals=0,
                          bytes_accessed=4 * (K1 * M + cin * K1 + 2 * cin * M))
    temp_cm = pl.pallas_call(
        _decode_residual_kernel,
        out_shape=jax.ShapeDtypeStruct((cin, M), dtype),
        grid_spec=pltpu.PrefetchScalarGridSpec(
            num_scalar_prefetch=0,
            grid=grid,
            in_specs=[pl.BlockSpec((K1, m_tile), lambda m: (0, m)),
                      pl.BlockSpec((cin, K1), lambda m: (0, 0)),
                      pl.BlockSpec((cin, m_tile), lambda m: (0, m))],
            out_specs=pl.BlockSpec((cin, m_tile), lambda m: (0, m)),
        ),
        compiler_params=pltpu.CompilerParams(
            dimension_semantics=("parallel",)),
        cost_estimate=ce1,
    )(p1, wdec_t, x_cm)

    # ---- stage 2: LeakyReLU(BN(code_z + conv_enc(temp))) ---------------------
    # Patches of `temp` are regrouped straight from its channel-major layout.
    p2 = _im2col_t_cm(temp_cm, B, H, W, k)          # (k*k*Cx, M)
    K2 = p2.shape[0]
    wenc_t = w_enc.reshape(K2, cz).T                # (Cz, K2)
    z_cm = _to_cm(code_z)                           # (Cz, M)
    g2 = gamma.reshape(cz, 1).astype(jnp.float32)
    b2 = beta.reshape(cz, 1).astype(jnp.float32)

    ce2 = pl.CostEstimate(flops=2 * M * cz * K2 + 10 * cz * M,
                          transcendentals=cz,
                          bytes_accessed=4 * (K2 * M + cz * K2 + 2 * cz * M + 2 * cz))
    # BatchNorm statistics need the whole (N,H,W) extent, so this stage runs as
    # one grid step; at CSC-scale shapes the block is only a few vregs.
    # TODO(synk): two-pass (stats, then normalize) grid for very large B*H*W.
    y_cm = pl.pallas_call(
        functools.partial(_encode_bn_lrelu_kernel, eps=eps,
                          slope=negative_slope),
        out_shape=jax.ShapeDtypeStruct((cz, M), dtype),
        grid_spec=pltpu.PrefetchScalarGridSpec(
            num_scalar_prefetch=0,
            grid=(1,),
            in_specs=[pl.BlockSpec((K2, M), lambda i: (0, 0)),
                      pl.BlockSpec((cz, K2), lambda i: (0, 0)),
                      pl.BlockSpec((cz, M), lambda i: (0, 0)),
                      pl.BlockSpec((cz, 1), lambda i: (0, 0)),
                      pl.BlockSpec((cz, 1), lambda i: (0, 0))],
            out_specs=pl.BlockSpec((cz, M), lambda i: (0, 0)),
        ),
        compiler_params=pltpu.CompilerParams(
            dimension_semantics=("arbitrary",)),
        cost_estimate=ce2,
    )(p2, wenc_t, z_cm, g2, b2)

    return _from_cm(y_cm, B, H, W)


# ----------------------------------------------------------------------------
# Dependent class `decoder` (three same-padded convs k=7/5/3 plus their sum)
# ----------------------------------------------------------------------------
def _decoder_kernel(p1_ref, p2_ref, p3_ref, w1_ref, w2_ref, w3_ref,
                    rec_ref, r1_ref, r2_ref, r3_ref):
    """p*_ref: (K_i, m) f32, w*_ref: (cout, K_i) f32, outputs: (cout, m)."""
    r1 = jnp.dot(w1_ref[...], p1_ref[...], preferred_element_type=jnp.float32)
    r1_ref[...] = r1.astype(r1_ref.dtype)
    r2 = jnp.dot(w2_ref[...], p2_ref[...], preferred_element_type=jnp.float32)
    r2_ref[...] = r2.astype(r2_ref.dtype)
    r3 = jnp.dot(w3_ref[...], p3_ref[...], preferred_element_type=jnp.float32)
    r3_ref[...] = r3.astype(r3_ref.dtype)
    rec_ref[...] = (r1 + r2 + r3).astype(rec_ref.dtype)


def decoder_forward(z1, z2, z3, w1, w2, w3):
    """decoder.forward: z*: (B,H,W,filters) NHWC, w*: (k,k,filters,channel) HWIO.
    Returns NHWC (rec_x, rec_x1, rec_x2, rec_x3)."""
    B, H, W, _ = z1.shape
    cout = w1.shape[-1]
    M = B * H * W
    dtype = z1.dtype

    p1, p2, p3 = _im2col_t(z1, 7), _im2col_t(z2, 5), _im2col_t(z3, 3)
    K1, K2, K3 = p1.shape[0], p2.shape[0], p3.shape[0]
    wt1 = w1.reshape(K1, cout).T
    wt2 = w2.reshape(K2, cout).T
    wt3 = w3.reshape(K3, cout).T

    m_tile = _m_tile(M)
    grid = (M // m_tile,)

    def p_spec(K):
        return pl.BlockSpec((K, m_tile), lambda m: (0, m))

    def w_spec(K):
        return pl.BlockSpec((cout, K), lambda m: (0, 0))

    out_spec = pl.BlockSpec((cout, m_tile), lambda m: (0, m))
    out_sd = jax.ShapeDtypeStruct((cout, M), dtype)

    Ksum = K1 + K2 + K3
    ce = pl.CostEstimate(flops=2 * M * cout * Ksum, transcendentals=0,
                         bytes_accessed=4 * (M * Ksum + cout * Ksum + 4 * cout * M))

    rec_t, r1_t, r2_t, r3_t = pl.pallas_call(
        _decoder_kernel,
        out_shape=(out_sd, out_sd, out_sd, out_sd),
        grid_spec=pltpu.PrefetchScalarGridSpec(
            num_scalar_prefetch=0,
            grid=grid,
            in_specs=[p_spec(K1), p_spec(K2), p_spec(K3),
                      w_spec(K1), w_spec(K2), w_spec(K3)],
            out_specs=[out_spec, out_spec, out_spec, out_spec],
        ),
        compiler_params=pltpu.CompilerParams(
            dimension_semantics=("parallel",)),
        cost_estimate=ce,
    )(p1, p2, p3, wt1, wt2, wt3)

    return (_from_cm(rec_t, B, H, W), _from_cm(r1_t, B, H, W),
            _from_cm(r2_t, B, H, W), _from_cm(r3_t, B, H, W))


# ----------------------------------------------------------------------------
# Reference + test harness
# ----------------------------------------------------------------------------
def _conv_ref(z, w, k):
    p = (k - 1) // 2
    return jax.lax.conv_general_dilated(
        z, w, window_strides=(1, 1), padding=[(p, p), (p, p)],
        dimension_numbers=("NHWC", "HWIO", "NHWC"))


if __name__ == "__main__":
    key = jax.random.PRNGKey(0)
    ks = jax.random.split(key, 12)

    # ---- CSCNet: in_channels=4, out_channel=8, kernel_size=3, padding=1 -----
    B, H, W = 2, 16, 16
    cin, cz, k = 4, 8, 3
    data_x = jax.random.normal(ks[0], (B, H, W, cin), jnp.float32)
    code_z = jax.random.normal(ks[1], (B, H, W, cz), jnp.float32)
    w_dec = jax.random.normal(ks[2], (k, k, cz, cin), jnp.float32) * (1.0 / (k * k * cz)) ** 0.5
    w_enc = jax.random.normal(ks[3], (k, k, cin, cz), jnp.float32) * (1.0 / (k * k * cin)) ** 0.5
    # A fresh BatchNorm2d has gamma=1, beta=0; non-trivial values exercise the
    # affine path (same semantics, just different parameter values).
    gamma = 1.0 + 0.1 * jax.random.normal(ks[4], (cz,), jnp.float32)
    beta = 0.1 * jax.random.normal(ks[5], (cz,), jnp.float32)

    out = jax.jit(cscnet_forward)(data_x, code_z, w_dec, w_enc, gamma, beta)
    jax.block_until_ready(out)

    # Reference: XLA convs + training-mode BN + LeakyReLU(0.2).
    dec = _conv_ref(code_z, w_dec, k)
    temp = data_x - dec
    det = _conv_ref(temp, w_enc, k)
    y = code_z + det
    mean = jnp.mean(y, axis=(0, 1, 2), keepdims=True)
    var = jnp.mean((y - mean) ** 2, axis=(0, 1, 2), keepdims=True)
    ybn = ((y - mean) * jax.lax.rsqrt(var + 1e-5)
           * gamma.reshape(1, 1, 1, -1) + beta.reshape(1, 1, 1, -1))
    ref = jnp.where(ybn >= 0, ybn, 0.2 * ybn)
    assert jnp.allclose(out, ref, atol=1e-4, rtol=1e-4)

    # ---- dependent `decoder` class: channel=4, filters=8 --------------------
    channel, filters = 4, 8
    z1 = jax.random.normal(ks[6], (B, H, W, filters), jnp.float32)
    z2 = jax.random.normal(ks[7], (B, H, W, filters), jnp.float32)
    z3 = jax.random.normal(ks[8], (B, H, W, filters), jnp.float32)
    w1 = jax.random.normal(ks[9], (7, 7, filters, channel), jnp.float32) * (2.0 / (7 * 7 * filters)) ** 0.5
    w2 = jax.random.normal(ks[10], (5, 5, filters, channel), jnp.float32) * (2.0 / (5 * 5 * filters)) ** 0.5
    w3 = jax.random.normal(ks[11], (3, 3, filters, channel), jnp.float32) * (2.0 / (3 * 3 * filters)) ** 0.5

    rec, r1, r2, r3 = jax.jit(decoder_forward)(z1, z2, z3, w1, w2, w3)
    jax.block_until_ready((rec, r1, r2, r3))

    ref1, ref2, ref3 = _conv_ref(z1, w1, 7), _conv_ref(z2, w2, 5), _conv_ref(z3, w3, 3)
    assert jnp.allclose(r1, ref1, atol=1e-4, rtol=1e-4)
    assert jnp.allclose(r2, ref2, atol=1e-4, rtol=1e-4)
    assert jnp.allclose(r3, ref3, atol=1e-4, rtol=1e-4)
    assert jnp.allclose(rec, ref1 + ref2 + ref3, atol=1e-4, rtol=1e-4)

    print("KERNEL_OK")
</pallas_src>

<mosaic_0001>
module attributes {stable_mosaic.version = 11 : i64} {
  func.func @_decode_residual_kernel(%arg0: i32, %arg1: memref<72x512xf32, #tpu.memory_space<vmem>>, %arg2: memref<4x72xf32, #tpu.memory_space<vmem>>, %arg3: memref<4x512xf32, #tpu.memory_space<vmem>>, %arg4: memref<4x512xf32, #tpu.memory_space<vmem>>) attributes {dimension_semantics = [#tpu.dimension_semantics<parallel>], iteration_bounds = array<i64: 1>, scalar_prefetch = 0 : i64, scratch_operands = 0 : i64, tpu.core_type = #tpu.core_type<tc>, window_params = [{transform_indices = @transform_0, window_bounds = array<i64: 72, 512>}, {pipeline_mode = #tpu.pipeline_mode<synchronous>, transform_indices = @transform_1, window_bounds = array<i64: 4, 72>}, {transform_indices = @transform_2, window_bounds = array<i64: 4, 512>}, {transform_indices = @transform_3, window_bounds = array<i64: 4, 512>}]} {
    %c0 = arith.constant 0 : index
    %c0_0 = arith.constant 0 : index
    %0 = vector.load %arg2[%c0, %c0_0] : memref<4x72xf32, #tpu.memory_space<vmem>>, vector<4x72xf32>
    %c0_1 = arith.constant 0 : index
    %c0_2 = arith.constant 0 : index
    %1 = vector.load %arg1[%c0_1, %c0_2] : memref<72x512xf32, #tpu.memory_space<vmem>>, vector<72x512xf32>
    %cst = arith.constant dense<0.000000e+00> : vector<4x512xf32>
    %2 = tpu.matmul %0, %1, %cst {dimension_numbers = #tpu.dot_dimension_numbers<[1], [0], [0], [1], [0, 0, 1, 1], [], []>} : vector<4x72xf32>, vector<72x512xf32>, vector<4x512xf32> -> vector<4x512xf32>
    %c0_3 = arith.constant 0 : index
    %c0_4 = arith.constant 0 : index
    %3 = vector.load %arg3[%c0_3, %c0_4] : memref<4x512xf32, #tpu.memory_space<vmem>>, vector<4x512xf32>
    %4 = arith.subf %3, %2 : vector<4x512xf32>
    %c0_5 = arith.constant 0 : index
    %c0_6 = arith.constant 0 : index
    %5 = vector.load %arg4[%c0_5, %c0_6] : memref<4x512xf32, #tpu.memory_space<vmem>>, vector<4x512xf32>
    tpu.vector_store %arg4[%c0_5, %c0_6], %4 {strides = array<i32>} : memref<4x512xf32, #tpu.memory_space<vmem>>, vector<4x512xf32>,
    return
  }
  func.func @transform_0(%arg0: i32) -> (i32, i32) {
    %c0_i32 = arith.constant 0 : i32
    %c0_i32_0 = arith.constant 0 : i32
    return %c0_i32, %arg0 : i32, i32
  }
  func.func @transform_1(%arg0: i32) -> (i32, i32) {
    %c0_i32 = arith.constant 0 : i32
    %c0_i32_0 = arith.constant 0 : i32
    %c0_i32_1 = arith.constant 0 : i32
    return %c0_i32, %c0_i32_0 : i32, i32
  }
  func.func @transform_2(%arg0: i32) -> (i32, i32) {
    %c0_i32 = arith.constant 0 : i32
    %c0_i32_0 = arith.constant 0 : i32
    return %c0_i32, %arg0 : i32, i32
  }
  func.func @transform_3(%arg0: i32) -> (i32, i32) {
    %c0_i32 = arith.constant 0 : i32
    %c0_i32_0 = arith.constant 0 : i32
    return %c0_i32, %arg0 : i32, i32
  }
}

module attributes {stable_mosaic.version = 11 : i64} {
  func.func @_encode_bn_lrelu_kernel(%arg0: i32, %arg1: memref<36x512xf32, #tpu.memory_space<vmem>>, %arg2: memref<8x36xf32, #tpu.memory_space<vmem>>, %arg3: memref<8x512xf32, #tpu.memory_space<vmem>>, %arg4: memref<8x1xf32, #tpu.memory_space<vmem>>, %arg5: memref<8x1xf32, #tpu.memory_space<vmem>>, %arg6: memref<8x512xf32, #tpu.memory_space<vmem>>) attributes {dimension_semantics = [#tpu.dimension_semantics<arbitrary>], iteration_bounds = array<i64: 1>, scalar_prefetch = 0 : i64, scratch_operands = 0 : i64, tpu.core_type = #tpu.core_type<tc>, window_params = [{pipeline_mode = #tpu.pipeline_mode<synchronous>, transform_indices = @transform_0, window_bounds = array<i64: 36, 512>}, {pipeline_mode = #tpu.pipeline_mode<synchronous>, transform_indices = @transform_1, window_bounds = array<i64: 8, 36>}, {pipeline_mode = #tpu.pipeline_mode<synchronous>, transform_indices = @transform_2, window_bounds = array<i64: 8, 512>}, {pipeline_mode = #tpu.pipeline_mode<synchronous>, transform_indices = @transform_3, window_bounds = array<i64: 8, 1>}, {pipeline_mode = #tpu.pipeline_mode<synchronous>, transform_indices = @transform_4, window_bounds = array<i64: 8, 1>}, {pipeline_mode = #tpu.pipeline_mode<synchronous>, transform_indices = @transform_5, window_bounds = array<i64: 8, 512>}]} {
    %c0 = arith.constant 0 : index
    %c0_0 = arith.constant 0 : index
    %0 = vector.load %arg3[%c0, %c0_0] : memref<8x512xf32, #tpu.memory_space<vmem>>, vector<8x512xf32>
    %c0_1 = arith.constant 0 : index
    %c0_2 = arith.constant 0 : index
    %1 = vector.load %arg2[%c0_1, %c0_2] : memref<8x36xf32, #tpu.memory_space<vmem>>, vector<8x36xf32>
    %c0_3 = arith.constant 0 : index
    %c0_4 = arith.constant 0 : index
    %2 = vector.load %arg1[%c0_3, %c0_4] : memref<36x512xf32, #tpu.memory_space<vmem>>, vector<36x512xf32>
    %cst = arith.constant dense<0.000000e+00> : vector<8x512xf32>
    %3 = tpu.matmul %1, %2, %cst {dimension_numbers = #tpu.dot_dimension_numbers<[1], [0], [0], [1], [0, 0, 1, 1], [], []>} : vector<8x36xf32>, vector<36x512xf32>, vector<8x512xf32> -> vector<8x512xf32>
    %4 = arith.addf %0, %3 : vector<8x512xf32>
    %cst_5 = arith.constant dense<0.000000e+00> : vector<8xf32>
    %5 = vector.multi_reduction <add>, %4, %cst_5 [1] : vector<8x512xf32> to vector<8xf32>
    %6 = vector.shape_cast %5 : vector<8xf32> to vector<8x1xf32>
    %cst_6 = arith.constant 0.001953125 : f32
    %7 = vector.broadcast %cst_6 : f32 to vector<8x1xf32>
    %8 = arith.mulf %6, %7 : vector<8x1xf32>
    %9 = vector.broadcast %8 : vector<8x1xf32> to vector<8x512xf32>
    %10 = arith.subf %4, %9 : vector<8x512xf32>
    %11 = arith.mulf %10, %10 : vector<8x512xf32>
    %cst_7 = arith.constant dense<0.000000e+00> : vector<8xf32>
    %12 = vector.multi_reduction <add>, %11, %cst_7 [1] : vector<8x512xf32> to vector<8xf32>
    %13 = vector.shape_cast %12 : vector<8xf32> to vector<8x1xf32>
    %cst_8 = arith.constant 0.001953125 : f32
    %14 = vector.broadcast %cst_8 : f32 to vector<8x1xf32>
    %15 = arith.mulf %13, %14 : vector<8x1xf32>
    %cst_9 = arith.constant 9.99999974E-6 : f32
    %16 = vector.broadcast %cst_9 : f32 to vector<8x1xf32>
    %17 = arith.addf %15, %16 : vector<8x1xf32>
    %18 = math.rsqrt %17 : vector<8x1xf32>
    %c0_10 = arith.constant 0 : index
    %c0_11 = arith.constant 0 : index
    %19 = vector.load %arg4[%c0_10, %c0_11] : memref<8x1xf32, #tpu.memory_space<vmem>>, vector<8x1xf32>
    %20 = arith.mulf %18, %19 : vector<8x1xf32>
    %21 = vector.broadcast %20 : vector<8x1xf32> to vector<8x512xf32>
    %22 = arith.mulf %10, %21 : vector<8x512xf32>
    %c0_12 = arith.constant 0 : index
    %c0_13 = arith.constant 0 : index
    %23 = vector.load %arg5[%c0_12, %c0_13] : memref<8x1xf32, #tpu.memory_space<vmem>>, vector<8x1xf32>
    %24 = vector.broadcast %23 : vector<8x1xf32> to vector<8x512xf32>
    %25 = arith.addf %22, %24 : vector<8x512xf32>
    %cst_14 = arith.constant 0.000000e+00 : f32
    %26 = vector.broadcast %cst_14 : f32 to vector<8x512xf32>
    %27 = arith.cmpf oge, %25, %26 : vector<8x512xf32>
    %cst_15 = arith.constant 2.000000e-01 : f32
    %28 = vector.broadcast %cst_15 : f32 to vector<8x512xf32>
    %29 = arith.mulf %28, %25 : vector<8x512xf32>
    %30 = arith.select %27, %25, %29 : vector<8x512xi1>, vector<8x512xf32>
    %c0_16 = arith.constant 0 : index
    %c0_17 = arith.constant 0 : index
    %31 = vector.load %arg6[%c0_16, %c0_17] : memref<8x512xf32, #tpu.memory_space<vmem>>, vector<8x512xf32>
    tpu.vector_store %arg6[%c0_16, %c0_17], %30 {strides = array<i32>} : memref<8x512xf32, #tpu.memory_space<vmem>>, vector<8x512xf32>,
    return
  }
  func.func @transform_0(%arg0: i32) -> (i32, i32) {
    %c0_i32 = arith.constant 0 : i32
    %c0_i32_0 = arith.constant 0 : i32
    %c0_i32_1 = arith.constant 0 : i32
    return %c0_i32, %c0_i32_0 : i32, i32
  }
  func.func @transform_1(%arg0: i32) -> (i32, i32) {
    %c0_i32 = arith.constant 0 : i32
    %c0_i32_0 = arith.constant 0 : i32
    %c0_i32_1 = arith.constant 0 : i32
    return %c0_i32, %c0_i32_0 : i32, i32
  }
  func.func @transform_2(%arg0: i32) -> (i32, i32) {
    %c0_i32 = arith.constant 0 : i32
    %c0_i32_0 = arith.constant 0 : i32
    %c0_i32_1 = arith.constant 0 : i32
    return %c0_i32, %c0_i32_0 : i32, i32
  }
  func.func @transform_3(%arg0: i32) -> (i32, i32) {
    %c0_i32 = arith.constant 0 : i32
    %c0_i32_0 = arith.constant 0 : i32
    %c0_i32_1 = arith.constant 0 : i32
    return %c0_i32, %c0_i32_0 : i32, i32
  }
  func.func @transform_4(%arg0: i32) -> (i32, i32) {
    %c0_i32 = arith.constant 0 : i32
    %c0_i32_0 = arith.constant 0 : i32
    %c0_i32_1 = arith.constant 0 : i32
    return %c0_i32, %c0_i32_0 : i32, i32
  }
  func.func @transform_5(%arg0: i32) -> (i32, i32) {
    %c0_i32 = arith.constant 0 : i32
    %c0_i32_0 = arith.constant 0 : i32
    %c0_i32_1 = arith.constant 0 : i32
    return %c0_i32, %c0_i32_0 : i32, i32
  }
}

</mosaic_0001>

<bundles_post_ra>
// kernel: cscnet_forward.2
= control target key start
LH: loop header
LB: loop body
LE: loop exit
PB: predicated region body
PF: predicated region fallthrough
CT: control target
= control target key end

     0   :  { %vm51_vm0 = vcmask 588800   ;;  %vm143_vm1 = vcmask 1043456   ;;  %s303_s0 = inlined_call_operand.vmem [shape: f32[72,512], index: 0, kind: input, shape index: {}]   ;;  %s304_s1 = inlined_call_operand.vmem [shape: f32[4,72], index: 1, kind: input, shape index: {}]   ;;  %s305_s2 = inlined_call_operand.vmem [shape: f32[4,512], index: 2, kind: input, shape index: {}]   ;;  %s306_s3 = inlined_call_operand.vmem [shape: f32[4,512], index: 3, kind: output, shape index: {}]  }
   0x1   :  { %v50_v0 = vld [vmem:[%s303_s0 + $0x118] sm:$0xff]  ;;  %v49_v1 = vld [vmem:[%s303_s0 + $0x110] sm:$0xff]  ;;  %v48_v4 = vld [vmem:[%s303_s0 + $0x108] sm:$0xff] }
   0x2   :  { %v46_v2 = vld [vmem:[%s303_s0 + $0xf8] sm:$0xff]  ;;  %122 = vmatpush.msra.mxu3 %v50_v0  ;;  %102 = vmatpush.msra.mxu2 %v49_v1  ;;  %v45_v3 = vld [vmem:[%s303_s0 + $0xf0] sm:$0xff]  ;;  %v47_v7 = vld [vmem:[%s303_s0 + $0x100] sm:$0xff] }
   0x3   :  { %v42_v5 = vld [vmem:[%s303_s0 + $0xd8] sm:$0xff]  ;;  %82 = vmatpush.msra.mxu1 %v48_v4  ;;  %v41_v6 = vld [vmem:[%s303_s0 + $0xd0] sm:$0xff]  ;;  %v44_v9 = vld [vmem:[%s303_s0 + $0xe8] sm:$0xff]  ;;  %62 = vmatpush.msra.mxu0 %v47_v7 }
   0x4   :  { %123 = vmatpush.msra.mxu3 %v46_v2  ;;  %103 = vmatpush.msra.mxu2 %v45_v3  ;;  %v38_v8 = vld [vmem:[%s303_s0 + $0xb8] sm:$0xff]  ;;  %v37_v10 = vld [vmem:[%s303_s0 + $0xb0] sm:$0xff]  ;;  %v43_v11 = vld [vmem:[%s303_s0 + $0xe0] sm:$0xff] }
   0x5   :  { %83 = vmatpush.msra.mxu1 %v44_v9  ;;  %v40_v12 = vld [vmem:[%s303_s0 + $0xc8] sm:$0xff]  ;;  %v39_v13 = vld [vmem:[%s303_s0 + $0xc0] sm:$0xff]  ;;  %v34_v15 = vld [vmem:[%s303_s0 + $0x98] sm:$0xff]  ;;  %63 = vmatpush.msra.mxu0 %v43_v11 }
   0x6   :  { %124 = vmatpush.msra.mxu3 %v42_v5  ;;  %104 = vmatpush.msra.mxu2 %v41_v6  ;;  %v36_v14 = vld [vmem:[%s303_s0 + $0xa8] sm:$0xff]  ;;  %v33_v16 = vld [vmem:[%s303_s0 + $0x90] sm:$0xff]  ;;  %v35_v17 = vld [vmem:[%s303_s0 + $0xa0] sm:$0xff] }
   0x7   :  { %84 = vmatpush.msra.mxu1 %v40_v12  ;;  %v32_v18 = vld [vmem:[%s303_s0 + $0x88] sm:$0xff]  ;;  %v30_v19 = vld [vmem:[%s303_s0 + $0x78] sm:$0xff]  ;;  %64 = vmatpush.msra.mxu0 %v39_v13  ;;  %v29_v20 = vld [vmem:[%s303_s0 + $0x70] sm:$0xff] }
   0x8   :  { %125 = vmatpush.msra.mxu3 %v38_v8  ;;  %105 = vmatpush.msra.mxu2 %v37_v10  ;;  %v31_v21 = vld [vmem:[%s303_s0 + $0x80] sm:$0xff]  ;;  %v28_v22 = vld [vmem:[%s303_s0 + $0x68] sm:$0xff]  ;;  %v26_v23 = vld [vmem:[%s303_s0 + $0x58] sm:$0xff] }
   0x9   :  { %85 = vmatpush.msra.mxu1 %v36_v14  ;;  %65 = vmatpush.msra.mxu0 %v35_v17  ;;  %v25_v24 = vld [vmem:[%s303_s0 + $0x50] sm:$0xff]  ;;  %v27_v25 = vld [vmem:[%s303_s0 + $0x60] sm:$0xff]  ;;  %v24_v26 = vld [vmem:[%s303_s0 + $0x48] sm:$0xff] }
   0xa   :  { %126 = vmatpush.msra.mxu3 %v34_v15  ;;  %106 = vmatpush.msra.mxu2 %v33_v16  ;;  %v22_v27 = vld [vmem:[%s303_s0 + $0x38] sm:$0xff]  ;;  %v21_v28 = vld [vmem:[%s303_s0 + $0x30] sm:$0xff]  ;;  %v23_v29 = vld [vmem:[%s303_s0 + $0x40] sm:$0xff] }
   0xb   :  { %86 = vmatpush.msra.mxu1 %v32_v18  ;;  %66 = vmatpush.msra.mxu0 %v31_v21  ;;  %v20_v30 = vld [vmem:[%s303_s0 + $0x28] sm:$0xff]  ;;  %v18_v31 = vld [vmem:[%s303_s0 + $0x18] sm:$0xff]  ;;  %v17_v32 = vld [vmem:[%s303_s0 + $0x10] sm:$0xff] }
   0xc   :  { %127 = vmatpush.msra.mxu3 %v30_v19  ;;  %107 = vmatpush.msra.mxu2 %v29_v20  ;;  %v14_v33 = vld [vmem:[%s304_s1] sm:$0xf]  ;;  %v16_v35 = vld [vmem:[%s303_s0 + $0x8] sm:$0xff] }
   0xd   :  { %87 = vmatpush.msra.mxu1 %v28_v22  ;;  %67 = vmatpush.msra.mxu0 %v27_v25  ;;  %v19_v34 = vld [vmem:[%s303_s0 + $0x20] sm:$0xff]  ;;  %v136_v46 = vld [vmem:[%s305_s2 + $0x8] sm:$0xff] }
   0xe   :  { %128 = vmatpush.msra.mxu3 %v26_v23  ;;  %108 = vmatpush.msra.mxu2 %v25_v24  ;;  %v15_v36 = vld [vmem:[%s303_s0] sm:$0xff] }
   0xf   :  { %88 = vmatpush.msra.mxu1 %v24_v26  ;;  %68 = vmatpush.msra.mxu0 %v23_v29  ;;  %v135_v39 = vld [vmem:[%s305_s2] sm:$0xff] }
  0x10   :  { %129 = vmatpush.msra.mxu3 %v22_v27  ;;  %109 = vmatpush.msra.mxu2 %v21_v28 }
  0x11   :  { %89 = vmatpush.msra.mxu1 %v20_v30  ;;  %69 = vmatpush.msra.mxu0 %v19_v34 }
  0x12   :  { %130 = vmatpush.msra.mxu3 %v18_v31  ;;  %110 = vmatpush.msra.mxu2 %v17_v32 }
  0x13   :  { %159 = vmatmul.msk.f32.vlgmr.msra.gmra.mxu3 %vm51_vm0, %v14_v33  ;;  %158 = vmatmul.msk.f32.vlgmr.msra.gmra.mxu2 %vm51_vm0, %v14_v33 }
  0x14   :  { %90 = vmatpush.msra.mxu1 %v16_v35  ;;  %70 = vmatpush.msra.mxu0 %v15_v36 }
  0x15   :  { %157 = vmatmul.msk.f32.vlgmr.msra.gmra.mxu1 %vm51_vm0, %v14_v33  ;;  %156 = vmatmul.msk.f32.vlgmr.msra.gmra.mxu0 %vm51_vm0, %v14_v33 }
  0x92   :  { %v92_v37 = vpop.f32.mrf.mxu1  ;;  %v72_v40 = vpop.f32.mrf.mxu0 }
  0x93   :  { %v141_v38 = vrot.slane %v92_v37, 4 }
  0x95   :  { %v144_v41 = vsel %vm143_vm1, %v72_v40, %v141_v38 }
  0x96   :  { %v132_v42 = vpop.f32.mrf.mxu3  ;;  %v148_v43 = vsub.f32 %v135_v39, %v144_v41  ;;  %v112_v44 = vpop.f32.mrf.mxu2 }
  0x97   :  { %v142_v45 = vrot.slane %v132_v42, 4 }
  0x98   :  { %150 = vst [vmem:[%s306_s3] sm:$0xff] %v148_v43 }
  0x99   :  { %v145_v47 = vsel %vm143_vm1, %v112_v44, %v142_v45 }
  0x9a   :  { %v149_v48 = vsub.f32 %v136_v46, %v145_v47 }
  0x9c   :  { %151 = vst [vmem:[%s306_s3 + $0x8] sm:$0xff] %v149_v48 }

// kernel: cscnet_forward.3
= control target key start
LH: loop header
LB: loop body
LE: loop exit
PB: predicated region body
PF: predicated region fallthrough
CT: control target
= control target key end

     0   :  { %vm49_vm0 = vcmask 1043456   ;;  %vm45_vm1 = vcmask 293888   ;;  %v231_v49 = vmov 0   ;;  %s355_s0 = inlined_call_operand.vmem [shape: f32[36,512], index: 0, kind: input, shape index: {}]   ;;  %s356_s1 = inlined_call_operand.vmem [shape: f32[8,36], index: 1, kind: input, shape index: {}]   ;;  %s357_s2 = inlined_call_operand.vmem [shape: f32[8,512], index: 2, kind: input, shape index: {}]   ;;  %s358_s3 = inlined_call_operand.vmem [shape: f32[8,1], index: 3, kind: input, shape index: {}]   ;;  %s359_s4 = inlined_call_operand.vmem [shape: f32[8,1], index: 4, kind: input, shape index: {}]   ;;  %s360_s5 = inlined_call_operand.vmem [shape: f32[8,512], index: 5, kind: output, shape index: {}]  }
   0x1   :  { %v43_v0 = vld [vmem:[%s355_s0 + $0x90] sm:$0xf]  ;;  %v44_v2 = vld [vmem:[%s355_s0 + $0x98] sm:$0xf]  ;;  %v41_v3 = vld [vmem:[%s355_s0 + $0x80] sm:$0xf]  ;;  %227 = vset.pattern.permute.xlu1 %v231_v49  ;;  %228 = vset.pattern.permute.xlu0 %v231_v49 }
   0x2   :  { %v39_v1 = vld [vmem:[%s355_s0 + $0x70] sm:$0xff]  ;;  %222 = vmatpush.msk.msra.mxu2 %vm49_vm0, %v43_v0  ;;  %224 = vmatpush.msk.msra.mxu3 %vm49_vm0, %v44_v2  ;;  %v42_v4 = vld [vmem:[%s355_s0 + $0x88] sm:$0xf]  ;;  %v40_v6 = vld [vmem:[%s355_s0 + $0x78] sm:$0xff] }
   0x3   :  { %v35_v5 = vld [vmem:[%s355_s0 + $0x50] sm:$0xff]  ;;  %218 = vmatpush.msk.msra.mxu0 %vm49_vm0, %v41_v3  ;;  %220 = vmatpush.msk.msra.mxu1 %vm49_vm0, %v42_v4  ;;  %v37_v7 = vld [vmem:[%s355_s0 + $0x60] sm:$0xff]  ;;  %v38_v8 = vld [vmem:[%s355_s0 + $0x68] sm:$0xff] }
   0x4   :  { %114 = vmatpush.msra.mxu2 %v39_v1  ;;  %134 = vmatpush.msra.mxu3 %v40_v6  ;;  %v36_v9 = vld [vmem:[%s355_s0 + $0x58] sm:$0xff]  ;;  %v33_v10 = vld [vmem:[%s355_s0 + $0x40] sm:$0xff]  ;;  %v31_v11 = vld [vmem:[%s355_s0 + $0x30] sm:$0xff] }
   0x5   :  { %74 = vmatpush.msra.mxu0 %v37_v7  ;;  %94 = vmatpush.msra.mxu1 %v38_v8  ;;  %v34_v12 = vld [vmem:[%s355_s0 + $0x48] sm:$0xff]  ;;  %v32_v13 = vld [vmem:[%s355_s0 + $0x38] sm:$0xff]  ;;  %v29_v14 = vld [vmem:[%s355_s0 + $0x20] sm:$0xff] }
   0x6   :  { %115 = vmatpush.msra.mxu2 %v35_v5  ;;  %135 = vmatpush.msra.mxu3 %v36_v9  ;;  %v30_v15 = vld [vmem:[%s355_s0 + $0x28] sm:$0xff]  ;;  %v27_v16 = vld [vmem:[%s355_s0 + $0x10] sm:$0xff]  ;;  %v28_v17 = vld [vmem:[%s355_s0 + $0x18] sm:$0xff] }
   0x7   :  { %75 = vmatpush.msra.mxu0 %v33_v10  ;;  %95 = vmatpush.msra.mxu1 %v34_v12  ;;  %v24_v18 = vld [vmem:[%s356_s1] sm:$0xff]  ;;  %v26_v20 = vld [vmem:[%s355_s0 + $0x8] sm:$0xff]  ;;  %v22_v27 = vld [vmem:[%s357_s2 + $0x10] sm:$0xff] }
   0x8   :  { %116 = vmatpush.msra.mxu2 %v31_v11  ;;  %136 = vmatpush.msra.mxu3 %v32_v13  ;;  %v25_v19 = vld [vmem:[%s355_s0] sm:$0xff]  ;;  %v21_v22 = vld [vmem:[%s357_s2 + $0x8] sm:$0xff]  ;;  %v23_v28 = vld [vmem:[%s357_s2 + $0x18] sm:$0xff] }
   0x9   :  { %76 = vmatpush.msra.mxu0 %v29_v14  ;;  %96 = vmatpush.msra.mxu1 %v30_v15  ;;  %v20_v21 = vld [vmem:[%s357_s2] sm:$0xff] }
   0xa   :  { %117 = vmatpush.msra.mxu2 %v27_v16  ;;  %137 = vmatpush.msra.mxu3 %v28_v17  ;;  %v177_v59 = vld [vmem:[%s358_s3] sm:$0xff] }
   0xb   :  { %223 = vmatmul.msk.f32.vlgmr.msra.gmra.mxu2 %vm45_vm1, %v24_v18  ;;  %225 = vmatmul.msk.f32.vlgmr.msra.gmra.mxu3 %vm45_vm1, %v24_v18  ;;  %v188_v62 = vld [vmem:[%s359_s4] sm:$0xff] }
   0xc   :  { %77 = vmatpush.msra.mxu0 %v25_v19  ;;  %97 = vmatpush.msra.mxu1 %v26_v20 }
   0xd   :  { %219 = vmatmul.msk.f32.vlgmr.msra.gmra.mxu0 %vm45_vm1, %v24_v18  ;;  %221 = vmatmul.msk.f32.vlgmr.msra.gmra.mxu1 %vm45_vm1, %v24_v18 }
  0x8a   :  { %v79_v23 = vpop.f32.mrf.mxu0  ;;  %v99_v24 = vpop.f32.mrf.mxu1 }
  0x8b   :  { %v142_v25 = vadd.f32 %v79_v23, %v20_v21  ;;  %v143_v26 = vadd.f32 %v99_v24, %v21_v22 }
  0x8d   :  { %v146_v29 = vadd.f32 %v143_v26, %v142_v25 }
  0x8e   :  { %v119_v30 = vpop.f32.mrf.mxu2  ;;  %v139_v31 = vpop.f32.mrf.mxu3 }
  0x8f   :  { %v144_v32 = vadd.f32 %v119_v30, %v22_v27  ;;  %v145_v33 = vadd.f32 %v139_v31, %v23_v28 }
  0x91   :  { %v147_v34 = vadd.f32 %v146_v29, %v144_v32 }
  0x93   :  { %v148_v35 = vadd.f32 %v147_v34, %v145_v33 }
  0x95   :  { %149 = vadd.xlane.f32.xlu0 %v148_v35 }
 0x108   :  { %v150_v36 = vpop.xlane.xlu0 %149 }
 0x109   :  { %v151_v37 = vmul.f32 0.001953125, %v150_v36 }
 0x10b   :  { %v152_v38 = vsub.f32 %v142_v25, %v151_v37  ;;  %v153_v39 = vsub.f32 %v143_v26, %v151_v37  ;;  %v154_v40 = vsub.f32 %v144_v32, %v151_v37  ;;  %v155_v41 = vsub.f32 %v145_v33, %v151_v37 }
 0x10d   :  { %v156_v42 = vmul.f32 %v152_v38, %v152_v38  ;;  %v157_v43 = vmul.f32 %v153_v39, %v153_v39  ;;  %v158_v44 = vmul.f32 %v154_v40, %v154_v40  ;;  %v159_v46 = vmul.f32 %v155_v41, %v155_v41 }
 0x10f   :  { %v160_v45 = vadd.f32 %v157_v43, %v156_v42 }
 0x111   :  { %v161_v47 = vadd.f32 %v160_v45, %v158_v44 }
 0x113   :  { %v162_v48 = vadd.f32 %v161_v47, %v159_v46 }
 0x115   :  { %163 = vadd.xlane.f32.xlu0 %v162_v48 }
 0x188   :  { %v164_v50 = vpop.xlane.xlu0 %163 }
 0x189   :  { %v165_v51 = vmul.f32 0.001953125, %v164_v50 }
 0x18b   :  { %v166_v52 = vadd.f32 1e-05, %v165_v51 }
 0x18d   :  { %229 = vrsqrt.f32 %v166_v52  ;;  %vm173_vm3 = vweird.f32 %v166_v52 }
 0x193   :  { %v230_v53 = vpop.eup %229 }
 0x194   :  { %v168_v54 = vmul.f32 %v230_v53, %v166_v52  ;;  %vm174_vm2 = vweird.f32 %v230_v53 }
 0x195   :  { %vm175_vm4 = vmor %vm173_vm3, %vm174_vm2 }
 0x196   :  { %v169_v55 = vmul.f32 %v230_v53, %v168_v54 }
 0x198   :  { %v170_v56 = vmul.f32 0.5, %v169_v55 }
 0x19a   :  { %v171_v57 = vsub.f32 1.5, %v170_v56 }
 0x19c   :  { %v172_v58 = vmul.f32 %v230_v53, %v171_v57 }
 0x19e   :  { %v176_v60 = vsel %vm175_vm4, %v230_v53, %v172_v58 }
 0x19f   :  { %v178_v61 = vmul.f32 %v177_v59, %v176_v60 }
 0x1a1   :  { %181 = vperm.xlu1 %227, %v178_v61  }
 0x1a9   :  { %191 = vperm.xlu1 %227, %v188_v62  }
 0x213   :  { %v182_v63 = vpop.permute.xlu1 %181 }
 0x214   :  { %v184_v0 = vmul.f32 %v182_v63, %v152_v38  ;;  %v185_v1 = vmul.f32 %v182_v63, %v153_v39  ;;  %v186_v2 = vmul.f32 %v182_v63, %v154_v40  ;;  %v187_v3 = vmul.f32 %v182_v63, %v155_v41 }
 0x21b   :  { %v192_v4 = vpop.permute.xlu1 %191 }
 0x21c   :  { %v194_v5 = vadd.f32 %v192_v4, %v184_v0  ;;  %v195_v6 = vadd.f32 %v192_v4, %v185_v1  ;;  %v196_v7 = vadd.f32 %v192_v4, %v186_v2  ;;  %v197_v8 = vadd.f32 %v192_v4, %v187_v3 }
 0x21e   :  { %vm198_vm5 = vcmp.ge.f32.partialorder %v194_v5, 0.0  ;;  %vm199_vm6 = vcmp.ge.f32.partialorder %v195_v6, 0.0  ;;  %vm200_vm7 = vcmp.ge.f32.partialorder %v196_v7, 0.0  ;;  %vm201_vm8 = vcmp.ge.f32.partialorder %v197_v8, 0.0 }
 0x21f   :  { %v202_v9 = vmul.f32 0.2, %v194_v5  ;;  %v203_v10 = vmul.f32 0.2, %v195_v6  ;;  %v204_v11 = vmul.f32 0.2, %v196_v7 }
 0x220   :  { %v205_v12 = vmul.f32 0.2, %v197_v8 }
 0x221   :  { %v206_v13 = vsel %vm198_vm5, %v194_v5, %v202_v9  ;;  %v207_v14 = vsel %vm199_vm6, %v195_v6, %v203_v10  ;;  %v208_v15 = vsel %vm200_vm7, %v196_v7, %v204_v11 }
 0x222   :  { %v209_v16 = vsel %vm201_vm8, %v197_v8, %v205_v12  ;;  %210 = vst [vmem:[%s360_s5] sm:$0xff] %v206_v13 }
 0x223   :  { %211 = vst [vmem:[%s360_s5 + $0x8] sm:$0xff] %v207_v14 }
 0x224   :  { %212 = vst [vmem:[%s360_s5 + $0x10] sm:$0xff] %v208_v15 }
 0x225   :  { %213 = vst [vmem:[%s360_s5 + $0x18] sm:$0xff] %v209_v16 }

</bundles_post_ra>
